<compile_context>
chip_gen: v6e
topology: v6e:2x2x1
jax: 0.10.0
libtpu: 0.0.40
codegen_flags: <defaults>
</compile_context>

<pallas_src>
import jax
import jax.numpy as jnp
from jax.experimental import pallas as pl
from jax.experimental.pallas import tpu as pltpu


def _round_up(x, m):
    return ((x + m - 1) // m) * m


def _head_kernel(x_ref, w_ref, b_ref, o_ref):
    # x_ref: (1, tm, D)   w_ref: (D, N_pad)   b_ref: (1, N_pad)   o_ref: (1, n_cls, tm)
    acc = jnp.dot(x_ref[0], w_ref[...], preferred_element_type=jnp.float32)  # MXU, (tm, N_pad)
    acc = acc + b_ref[...].astype(jnp.float32)                               # VPU, row-broadcast
    acc_t = acc.T                                                            # XLU, (N_pad, tm)
    n_cls = o_ref.shape[1]
    o_ref[0] = acc_t[:n_cls, :].astype(o_ref.dtype)                          # lane-dense store


def decoder_linear_pallas(x, weight, bias, im_size, patch_size, *, tm=1024):
    """DecoderLinear.forward.

    x:      (B, HW, d_encoder)
    weight: (n_cls, d_encoder)   -- PyTorch nn.Linear layout
    bias:   (n_cls,)
    Returns (B, n_cls, GS, HW // GS) with GS = im_size[0] // patch_size.
    """
    B, HW, D = x.shape
    n_cls = weight.shape[0]
    GS = im_size[0] // patch_size

    LANE = 128
    # Pad only the tiny class dim: lane multiple, or 256-multiple for the 256-wide
    # MXU on v6e/v7x when n_cls > 128 (e.g. ADE20k's 150 classes).
    N_pad = _round_up(n_cls, 256 if n_cls > LANE else LANE)

    # Row-tile selection: lane-dense output last dim unless HW itself is tiny.
    if HW >= LANE:
        tm = min(_round_up(tm, LANE), _round_up(HW, LANE))
    else:
        tm = HW

    x_bytes = jnp.dtype(x.dtype).itemsize
    w_bytes = jnp.dtype(weight.dtype).itemsize

    def footprint(t):
        fb = 2 * t * D * x_bytes                 # x double buffer
        fb += 2 * n_cls * t * x_bytes            # output double buffer
        fb += D * N_pad * w_bytes + N_pad * 4    # resident weight + bias
        fb += 2 * t * N_pad * 4                  # f32 accumulator + transposed tile
        return fb

    # Keep the tile footprint within ~40 MiB (v7x has only 64 MiB physical VMEM).
    while tm >= 2 * LANE and footprint(tm) > 40 * 1024 * 1024:
        tm //= 2
    # Keep >= 4 grid steps (>= 2 per TensorCore) so pipelining / megacore help.
    while tm >= 2 * LANE and B * pl.cdiv(HW, tm) < 4:
        tm //= 2

    grid = (B, pl.cdiv(HW, tm))

    # One-off layout prep of the tiny weights only (x itself is untouched).
    w_t = jnp.pad(weight.T, ((0, 0), (0, N_pad - n_cls)))       # (D, N_pad)
    b_p = jnp.pad(bias, (0, N_pad - n_cls)).reshape(1, N_pad)   # (1, N_pad)

    vmem_limit = int(min(max(2 * footprint(tm) + (2 << 20), 32 * 1024 * 1024),
                         96 * 1024 * 1024))

    out = pl.pallas_call(
        _head_kernel,
        out_shape=jax.ShapeDtypeStruct((B, n_cls, HW), x.dtype),
        grid_spec=pltpu.PrefetchScalarGridSpec(
            num_scalar_prefetch=0,
            grid=grid,
            in_specs=[
                pl.BlockSpec((1, tm, D), lambda b, j: (b, j, 0)),   # x row tile (streamed)
                pl.BlockSpec((D, N_pad), lambda b, j: (0, 0)),      # W resident in VMEM
                pl.BlockSpec((1, N_pad), lambda b, j: (0, 0)),      # bias resident
            ],
            out_specs=pl.BlockSpec((1, n_cls, tm), lambda b, j: (b, 0, j)),
        ),
        compiler_params=pltpu.CompilerParams(
            dimension_semantics=("parallel", "parallel"),
            vmem_limit_bytes=vmem_limit,
        ),
    )(x, w_t, b_p)

    # The permute already happened inside the kernel; this reshape is pure layout.
    return out.reshape(B, n_cls, GS, HW // GS)


def _reference(x, weight, bias, im_size, patch_size):
    GS = im_size[0] // patch_size
    y = jnp.einsum("bnd,cd->bnc", x, weight, precision="highest") + bias
    B, HW, C = y.shape
    return y.reshape(B, GS, HW // GS, C).transpose(0, 3, 1, 2)


if __name__ == "__main__":
    # Small DecoderLinear config: n_cls=16 classes, patch_size=16, d_encoder=32.
    # im_size=(256,256) -> GS=16, HW=256 patches, B=2. tm auto-clamps to 128 so the
    # grid is (2, 2) = 4 steps, actually exercising pipelining + megacore sharding.
    n_cls, patch_size, d_encoder = 16, 16, 32
    B = 2
    im_size = (256, 256)
    GS = im_size[0] // patch_size
    HW = GS * (im_size[1] // patch_size)

    key = jax.random.PRNGKey(0)
    kx, kw = jax.random.split(key, 2)

    x = jax.random.normal(kx, (B, HW, d_encoder), dtype=jnp.float32)
    # init_weights: trunc_normal_(std=0.02) for the Linear weight, zero bias.
    weight = (0.02 * jax.random.truncated_normal(
        kw, -2.0, 2.0, (n_cls, d_encoder))).astype(jnp.float32)
    bias = jnp.zeros((n_cls,), dtype=jnp.float32)

    out = decoder_linear_pallas(x, weight, bias, im_size, patch_size)
    out = jax.block_until_ready(out)

    ref = _reference(x, weight, bias, im_size, patch_size)
    assert out.shape == (B, n_cls, GS, HW // GS), out.shape
    assert jnp.allclose(out, ref, atol=1e-5, rtol=1e-5), "mismatch vs reference"

    print("KERNEL_OK")
</pallas_src>

<mosaic_0001>
module attributes {stable_mosaic.version = 11 : i64} {
  func.func @_head_kernel(%arg0: i32, %arg1: i32, %arg2: memref<1x128x32xf32, #tpu.memory_space<vmem>>, %arg3: memref<32x128xf32, #tpu.memory_space<vmem>>, %arg4: memref<1x128xf32, #tpu.memory_space<vmem>>, %arg5: memref<1x16x128xf32, #tpu.memory_space<vmem>>) attributes {dimension_semantics = [#tpu.dimension_semantics<parallel>, #tpu.dimension_semantics<parallel>], iteration_bounds = array<i64: 2, 2>, scalar_prefetch = 0 : i64, scratch_operands = 0 : i64, tpu.core_type = #tpu.core_type<tc>, window_params = [{transform_indices = @transform_0, window_bounds = array<i64: 1, 128, 32>}, {pipeline_mode = #tpu.pipeline_mode<synchronous>, transform_indices = @transform_1, window_bounds = array<i64: 32, 128>}, {pipeline_mode = #tpu.pipeline_mode<synchronous>, transform_indices = @transform_2, window_bounds = array<i64: 1, 128>}, {transform_indices = @transform_3, window_bounds = array<i64: 1, 16, 128>}]} {
    %c0 = arith.constant 0 : index
    %c0_0 = arith.constant 0 : index
    %c0_1 = arith.constant 0 : index
    %0 = vector.load %arg2[%c0, %c0_0, %c0_1] : memref<1x128x32xf32, #tpu.memory_space<vmem>>, vector<1x128x32xf32>
    %1 = vector.shape_cast %0 : vector<1x128x32xf32> to vector<128x32xf32>
    %c0_2 = arith.constant 0 : index
    %c0_3 = arith.constant 0 : index
    %2 = vector.load %arg3[%c0_2, %c0_3] : memref<32x128xf32, #tpu.memory_space<vmem>>, vector<32x128xf32>
    %cst = arith.constant dense<0.000000e+00> : vector<128x128xf32>
    %3 = tpu.matmul %1, %2, %cst {dimension_numbers = #tpu.dot_dimension_numbers<[1], [0], [0], [1], [0, 0, 1, 1], [], []>} : vector<128x32xf32>, vector<32x128xf32>, vector<128x128xf32> -> vector<128x128xf32>
    %c0_4 = arith.constant 0 : index
    %c0_5 = arith.constant 0 : index
    %4 = vector.load %arg4[%c0_4, %c0_5] : memref<1x128xf32, #tpu.memory_space<vmem>>, vector<1x128xf32>
    %5 = vector.broadcast %4 : vector<1x128xf32> to vector<128x128xf32>
    %6 = arith.addf %3, %5 : vector<128x128xf32>
    %7 = tpu.transpose %6, [1, 0] : vector<128x128xf32> -> vector<128x128xf32>
    %8 = vector.extract_strided_slice %7 {offsets = [0, 0], sizes = [16, 128], strides = [1, 1]} : vector<128x128xf32> to vector<16x128xf32>
    %c0_6 = arith.constant 0 : index
    %c0_7 = arith.constant 0 : index
    %c0_8 = arith.constant 0 : index
    %9 = vector.load %arg5[%c0_6, %c0_7, %c0_8] : memref<1x16x128xf32, #tpu.memory_space<vmem>>, vector<1x16x128xf32>
    %10 = vector.shape_cast %9 : vector<1x16x128xf32> to vector<16x128xf32>
    %11 = vector.shape_cast %8 : vector<16x128xf32> to vector<1x16x128xf32>
    tpu.vector_store %arg5[%c0_6, %c0_7, %c0_8], %11 {strides = array<i32>} : memref<1x16x128xf32, #tpu.memory_space<vmem>>, vector<1x16x128xf32>,
    return
  }
  func.func @transform_0(%arg0: i32, %arg1: i32) -> (i32, i32, i32) {
    %c0_i32 = arith.constant 0 : i32
    %c0_i32_0 = arith.constant 0 : i32
    return %arg0, %arg1, %c0_i32 : i32, i32, i32
  }
  func.func @transform_1(%arg0: i32, %arg1: i32) -> (i32, i32) {
    %c0_i32 = arith.constant 0 : i32
    %c0_i32_0 = arith.constant 0 : i32
    %c0_i32_1 = arith.constant 0 : i32
    return %c0_i32, %c0_i32_0 : i32, i32
  }
  func.func @transform_2(%arg0: i32, %arg1: i32) -> (i32, i32) {
    %c0_i32 = arith.constant 0 : i32
    %c0_i32_0 = arith.constant 0 : i32
    %c0_i32_1 = arith.constant 0 : i32
    return %c0_i32, %c0_i32_0 : i32, i32
  }
  func.func @transform_3(%arg0: i32, %arg1: i32) -> (i32, i32, i32) {
    %c0_i32 = arith.constant 0 : i32
    %c0_i32_0 = arith.constant 0 : i32
    return %arg0, %c0_i32, %arg1 : i32, i32, i32
  }
}

</mosaic_0001>

<bundles_post_ra>
// kernel: tpu_custom_call.1
= control target key start
LH: loop header
LB: loop body
LE: loop exit
PB: predicated region body
PF: predicated region fallthrough
CT: control target
= control target key end

     0   :  { %8 = vsyncpa [#allocation3], 0  ;;  %s1020_s0 = inlined_call_operand.vmem [shape: f32[2,256,32], index: 0, kind: input, shape index: {}]   ;;  %s1021_s1 = inlined_call_operand.vmem [shape: f32[32,128], index: 1, kind: input, shape index: {}]   ;;  %s1022_s2 = inlined_call_operand.vmem [shape: f32[1,128], index: 2, kind: input, shape index: {}]   ;;  %s1023_s3 = inlined_call_operand.hbm [shape: f32[2,16,256], index: 3, kind: output, shape index: {}]  }
   0x1   :  { %10 = vsyncpa [#allocation3 + $0x1], 0  ;;  %s833_s12 = smov 0   ;;  %s835_s13 = smov 0  }
   0x2   :  { %s837_s14 = smov 0   ;;  %s839_s15 = smov 0  }
   0x3   :  { %s841_s16 = smov 0   ;;  %s843_s17 = smov 0  }
   0x4   :  { %s845_s18 = smov 0   ;;  %s847_s19 = smov 0  }
   0x5 LB: > { %s550_s20 = sadd.s32 4294967295, %s807_s19   ;;  %s551_s21 = sadd.s32 4294967294, %s807_s19   ;;  %s807_s19 = sphi %s847_s19, %s16_s19   ;;  %s803_s18 = sphi %s845_s18, %s1032_s18   ;;  %s799_s17 = sphi %s843_s17, %s1031_s17   ;;  %s795_s16 = sphi %s841_s16, %s1030_s16   ;;  %s791_s15 = sphi %s839_s15, %s1029_s15   ;;  %s787_s14 = sphi %s837_s14, %s1028_s14   ;;  %s783_s13 = sphi %s835_s13, %s1027_s13   ;;  %s779_s12 = sphi %s833_s12, %s1026_s12  }
   0x6   : > { %s25_s22 = sadd.s32 1, %s799_s17  ;;  %s28_s23 = sadd.s32 1, %s803_s18 }
   0x7   : > { %p26_p0 = scmp.ge.s32.totalorder %s25_s22, 2  ;;  %p117_p1 = scmp.ne.s32.totalorder %s787_s14, %s783_s13 }
   0x8   : > { %p118_p2 = scmp.eq.s32.totalorder %s550_s20, 3  ;;  %p123_p5 = scmp.ne.s32.totalorder %s783_s13, %s779_s12 }
   0x9   : > { %s1034_s22 = smov (%p26_p0, %s25_s22), 0  ;;  %s1036_s23 = smov (!%p26_p0, %s28_s23), %s803_s18 }
   0xa   : > { %s103_s24 = ssub.s32 %s799_s17, %s1034_s22  ;;  %p884_p3 = por %p118_p2, %p117_p1 }
   0xb   : > { %p30_p4 = scmp.ge.s32.totalorder %s1036_s23, 2  ;;  %p124_p6 = scmp.eq.s32.totalorder %s551_s21, 3 }
   0xc   : > { %p554_p7 = scmp.ge.s32.totalorder %s807_s19, 1  ;;  %p161_p9 = scmp.lt.s32.totalorder %s807_s19, 5 }
   0xd   : > { %s1038_s23 = smov (%p30_p4, %s1036_s23), 0  ;;  %p893_p8 = por %p124_p6, %p123_p5 }
   0xe   : > { %s102_s27 = ssub.s32 %s803_s18, %s1038_s23  ;;  %s107_s28 = sadd.s32 1, %s787_s14 }
   0xf   : > { %s104_s29 = sor.u32 %s103_s24, %s102_s27  ;;  %p162_p10 = pnand %p554_p7, %p161_p9 }
  0x10   : > { %p105_p11 = scmp.eq.s32.totalorder %s104_s29, 0  ;;  %s556_s8 = sshll.u32 (!%p162_p10), %s791_s15, 4 }
  0x11   : > { %165 = sbr.rel (%p162_p10) target bundleno = 373 (0x175), region = 32  ;;  %p190_p12 = scmp.lt.s32.totalorder (!%p162_p10), %s795_s16, 1 }
  0x12   : > { %s902_s30 = scalar_select %p105_p11, %s787_s14, %s107_s28  }
  0x13   : > { %p192_p13 = scmp.lt.s32.totalorder (!%p162_p10), %s556_s8, 31  ;;  %s577_s9 = sshll.u32 (!%p162_p10), %s795_s16, 2 }
  0x14   : > { %s809_s4 = smov (!%p162_p10), [#allocation2]  }
  0x16   : > { %v218_v0 = vld [vmem:[%s1021_s1 + $0x18] sm:$0xff]  ;;  %v217_v1 = vld [vmem:[%s1021_s1 + $0x10] sm:$0xff]  ;;  %v216_v2 = vld [vmem:[%s1021_s1 + $0x8] sm:$0xff]  ;;  %s191_s11 = scalar_select %p190_p12, %s795_s16, 1  ;;  %vm226_vm0 = vcmask 261120  }
  0x17   : > { %601 = vmatprep.subr.mxu0 %v218_v0  ;;  %633 = vmatprep.subr.mxu1 %v218_v0  ;;  %s1040_s8 = smov (!%p192_p13, %s556_s8), 31  ;;  %v215_v3 = vld [vmem:[%s1021_s1] sm:$0xff] }
  0x18   : > { %602 = vmatpush3.msra.mxu0 %v218_v0  ;;  %637 = vmatpush3.msra.mxu1 %v218_v0  ;;  %s557_s24 = sshll.u32 %s191_s11, 5  ;;  %v559_v21 = vld [vmem:[%s1022_s2] ss:$0 sm:$0xff]  ;;  %s466_s11 = sadd.s32 %s791_s15, %s577_s9 }
  0x19   : > { %603 = vmatprep.subr.mxu0 %v217_v1  ;;  %634 = vmatprep.subr.mxu1 %v217_v1  ;;  %s195_s27 = sadd.s32 %s557_s24, %s1040_s8  ;;  %s186_s8 = sand.u32 1, %s783_s13  }
  0x1a   : > { %604 = vmatpush3.msra.mxu0 %v217_v1  ;;  %638 = vmatpush3.msra.mxu1 %v217_v1  ;;  %s558_s28 = sshll.u32 %s195_s27, 3  ;;  %s555_s10 = sshll.u32 %s186_s8, 4 }
  0x1b   : > { %605 = vmatprep.subr.mxu0 %v216_v2  ;;  %635 = vmatprep.subr.mxu1 %v216_v2  ;;  %s922_s5 = scalar_lea.vmem %s1020_s0, %s558_s28  ;;  %s188_s20 = scalar_lea.vmem [#allocation2], %s555_s10 }
  0x1c   : > { %606 = vmatpush3.msra.mxu0 %v216_v2  ;;  %639 = vmatpush3.msra.mxu1 %v216_v2  ;;  %v199_v4 = vld [vmem:[%s922_s5] sm:$0xff]  ;;  %v200_v5 = vld [vmem:[%s922_s5 + $0x8] sm:$0xff]  ;;  %v201_v6 = vld [vmem:[%s922_s5 + $0x10] sm:$0xff]  ;;  %s469_s21 = sshll.u32 %s188_s20, 4  ;;  %s578_s24 = sshll.u32 %s466_s11, 7  ;;  %s962_s21 = int_to_ptr.vmem [resolvable:$true] %s469_s21 }
  0x1d   : > { %607 = vmatprep.subr.mxu0 %v215_v3  ;;  %636 = vmatprep.subr.mxu1 %v215_v3  ;;  %v207_v7 = vld [vmem:[%s922_s5 + $0x40] sm:$0xff]  ;;  %v202_v8 = vld [vmem:[%s922_s5 + $0x18] sm:$0xff]  ;;  %v208_v9 = vld [vmem:[%s922_s5 + $0x48] sm:$0xff]  ;;  %s967_s29 = scalar_lea.hbm %s1023_s3, %s578_s24  ;;  %s969_s16 = scalar_lea.sflag [#allocation3], %s186_s8 }
  0x1e   : > { %608 = vmatpush3.msra.mxu0 %v215_v3  ;;  %640 = vmatpush3.msra.mxu1 %v215_v3  ;;  %v209_v10 = vld [vmem:[%s922_s5 + $0x50] sm:$0xff]  ;;  %v203_v11 = vld [vmem:[%s922_s5 + $0x20] sm:$0xff]  ;;  %v210_v12 = vld [vmem:[%s922_s5 + $0x58] sm:$0xff]  ;;  %s715_s15 = scalar_lea.vmem %s962_s21, 256 }
  0x1f   : > { %609 = vmatprep.mubr.msk.f32.mxu0 %vm226_vm0, %v199_v4  ;;  %621 = vmatprep.mubr.msk.f32.mxu1 %vm226_vm0, %v207_v7  ;;  %v211_v13 = vld [vmem:[%s922_s5 + $0x60] sm:$0xff]  ;;  %v204_v14 = vld [vmem:[%s922_s5 + $0x28] sm:$0xff]  ;;  %v205_v15 = vld [vmem:[%s922_s5 + $0x30] sm:$0xff]  ;;  %p716_p0 = scmp.ne.s32.totalorder %s962_s21, %s715_s15 }
  0x20   : > { %610 = vmatmul.mubr.msk.f32.vlgmr.msra.gmra.mxu0 %vm226_vm0, %v200_v5  ;;  %622 = vmatmul.mubr.msk.f32.vlgmr.msra.gmra.mxu1 %vm226_vm0, %v208_v9  ;;  %v212_v16 = vld [vmem:[%s922_s5 + $0x68] sm:$0xff]  ;;  %v213_v17 = vld [vmem:[%s922_s5 + $0x70] sm:$0xff]  ;;  %v206_v18 = vld [vmem:[%s922_s5 + $0x38] sm:$0xff] }
  0x21   : > { %612 = vmatprep.mubr.msk.f32.mxu0 %vm226_vm0, %v201_v6  ;;  %624 = vmatprep.mubr.msk.f32.mxu1 %vm226_vm0, %v209_v10  ;;  %v214_v19 = vld [vmem:[%s922_s5 + $0x78] sm:$0xff]  ;;  %p717_p1 = pnand %p716_p0, %p884_p3  ;;  %s719_s5 = sshll.u32 %s809_s4, 4  ;;  %s720_s5 = int_to_ptr.vmem [resolvable:$false] %s719_s5 }
  0x22   : > { %s721_s6 = scalar_lea.vmem %s720_s5, 512  ;;  %p722_p4 = scmp.lt.s32.totalorder %s962_s21, %s720_s5 }
  0x23   : > { %p718_p2 = pneg %p717_p1  ;;  %p723_p5 = scmp.lt.s32.totalorder %s721_s6, %s715_s15 }
  0x24   : > { %613 = vmatmul.mubr.msk.f32.gmra.mxu0 %vm226_vm0, %v202_v8  ;;  %625 = vmatmul.mubr.msk.f32.gmra.mxu1 %vm226_vm0, %v210_v12 }
  0x25   : > { %615 = vmatprep.mubr.msk.f32.mxu0 %vm226_vm0, %v203_v11  ;;  %627 = vmatprep.mubr.msk.f32.mxu1 %vm226_vm0, %v211_v13  ;;  %p724_p6 = por %p723_p5, %p722_p4 }
  0x27   : > { %p725_p7 = pnand %p724_p6, %p718_p2 }
  0x28   : > { %616 = vmatmul.mubr.msk.f32.gmra.mxu0 %vm226_vm0, %v204_v14  ;;  %628 = vmatmul.mubr.msk.f32.gmra.mxu1 %vm226_vm0, %v212_v16 }
  0x29   : > { %618 = vmatprep.mubr.msk.f32.mxu0 %vm226_vm0, %v205_v15  ;;  %630 = vmatprep.mubr.msk.f32.mxu1 %vm226_vm0, %v213_v17 }
  0x2c   : > { %619 = vmatmul.mubr.msk.f32.gmra.mxu0 %vm226_vm0, %v206_v18  ;;  %631 = vmatmul.mubr.msk.f32.gmra.mxu1 %vm226_vm0, %v214_v19 }
  0xe0   : > { %v611_v20 = vpop.f32.mrf.mxu0  ;;  %v623_v36 = vpop.f32.mrf.mxu1 }
  0xe1   : > { %v347_v25 = vadd.f32 %v611_v20, %v559_v21  ;;  %v387_v41 = vadd.f32 %v623_v36, %v559_v21 }
  0xe2   : > { %v341_v22 = vpop.f32.mrf.mxu0  ;;  %v381_v38 = vpop.f32.mrf.mxu1 }
  0xe3   : > { %v342_v23 = vadd.f32 %v559_v21, %v341_v22  ;;  %v382_v39 = vadd.f32 %v559_v21, %v381_v38 }
  0xe4   : > { %v614_v24 = vpop.f32.mrf.mxu0  ;;  %v626_v40 = vpop.f32.mrf.mxu1 }
  0xe5   : > { %420 = vxpose.xlu0.b32.start [1/16] (narrow) %v342_v23, 16  ;;  %v357_v29 = vadd.f32 %v614_v24, %v559_v21  ;;  %v397_v45 = vadd.f32 %v626_v40, %v559_v21 }
  0xe6   : > { %v351_v26 = vpop.f32.mrf.mxu0  ;;  %v391_v42 = vpop.f32.mrf.mxu1 }
  0xe7   : > { %v352_v27 = vadd.f32 %v559_v21, %v351_v26  ;;  %v392_v43 = vadd.f32 %v559_v21, %v391_v42 }
  0xe8   : > { %v617_v28 = vpop.f32.mrf.mxu0  ;;  %v629_v44 = vpop.f32.mrf.mxu1 }
  0xe9   : > { %421 = vxpose.xlu0.b32.cont [2/16] (narrow) %v347_v25, 16  ;;  %v367_v33 = vadd.f32 %v617_v28, %v559_v21  ;;  %v407_v49 = vadd.f32 %v629_v44, %v559_v21 }
  0xea   : > { %v361_v30 = vpop.f32.mrf.mxu0  ;;  %v401_v46 = vpop.f32.mrf.mxu1 }
  0xeb   : > { %v362_v31 = vadd.f32 %v559_v21, %v361_v30  ;;  %v402_v47 = vadd.f32 %v559_v21, %v401_v46 }
  0xec   : > { %v620_v32 = vpop.f32.mrf.mxu0  ;;  %v632_v48 = vpop.f32.mrf.mxu1 }
  0xed   : > { %422 = vxpose.xlu0.b32.cont [3/16] (narrow) %v352_v27, 16  ;;  %v377_v37 = vadd.f32 %v620_v32, %v559_v21  ;;  %v417_v52 = vadd.f32 %v632_v48, %v559_v21 }
  0xee   : > { %v371_v34 = vpop.f32.mrf.mxu0  ;;  %v411_v50 = vpop.f32.mrf.mxu1 }
  0xef   : > { %v372_v35 = vadd.f32 %v559_v21, %v371_v34  ;;  %v412_v51 = vadd.f32 %v559_v21, %v411_v50 }
  0xf1   : > { %423 = vxpose.xlu0.b32.cont [4/16] (narrow) %v357_v29, 16 }
  0xf5   : > { %424 = vxpose.xlu0.b32.cont [5/16] (narrow) %v362_v31, 16 }
  0xf9   : > { %425 = vxpose.xlu0.b32.cont [6/16] (narrow) %v367_v33, 16 }
  0xfd   : > { %426 = vxpose.xlu0.b32.cont [7/16] (narrow) %v372_v35, 16 }
 0x101   : > { %427 = vxpose.xlu0.b32.cont [8/16] (narrow) %v377_v37, 16 }
 0x105   : > { %428 = vxpose.xlu0.b32.cont [9/16] (narrow) %v382_v39, 16 }
 0x109   : > { %429 = vxpose.xlu0.b32.cont [10/16] (narrow) %v387_v41, 16 }
 0x10d   : > { %430 = vxpose.xlu0.b32.cont [11/16] (narrow) %v392_v43, 16 }
 0x111   : > { %431 = vxpose.xlu0.b32.cont [12/16] (narrow) %v397_v45, 16 }
 0x115   : > { %432 = vxpose.xlu0.b32.cont [13/16] (narrow) %v402_v47, 16 }
 0x119   : > { %433 = vxpose.xlu0.b32.cont [14/16] (narrow) %v407_v49, 16 }
 0x11d   : > { %434 = vxpose.xlu0.b32.cont [15/16] (narrow) %v412_v51, 16 }
 0x121   : > { %435 = vxpose.xlu0.b32.end [16/16] (narrow) %v417_v52, 16 }
 0x161   : > { %v436_v53 = vpop.trf.xlu0 }
 0x162   : > { %452 = vst [vmem:[%s188_s20] sm:$0xff] %v436_v53 }
 0x165   : > { %v437_v54 = vpop.trf.xlu0 }
 0x166   : > { %453 = vst [vmem:[%s188_s20 + $0x8] sm:$0xff] %v437_v54 }
 0x167   : > { %728 = shalt.err (!%p725_p7)
}
 0x168   : > { %s729_s7 = scalar_lea.hbm %s967_s29, 256  ;;  %s733_s10 = scalar_lea.hbm %s1023_s3, 1024 }
 0x169   : > { %p730_p9 = scmp.ne.s32.totalorder %s967_s29, %s729_s7  ;;  %p734_p12 = scmp.lt.s32.totalorder %s967_s29, %s1023_s3 }
 0x16a   : > { %p735_p13 = scmp.lt.s32.totalorder %s733_s10, %s729_s7 }
 0x16b   : > { %p731_p10 = pnand %p730_p9, %p884_p3 }
 0x16c   : > { %p736_p0 = por %p735_p13, %p734_p12 }
 0x16d   : > { %p732_p11 = pneg %p731_p10 }
 0x16f   : > { %p737_p1 = pnand %p736_p0, %p732_p11 }
 0x171   : > { %740 = shalt.err (!%p737_p1)
}
 0x172   : > { %s810_s24 = smov 128   ;;  %s811_s27 = smov 256  }
 0x173   : > { %s812_s28 = smov 8  }
 0x174   : > { %641 = dma.vmem_to_hbm [thread:$0]  (%p884_p3), %s962_s21, 256, %s967_s29, %s969_s16, %s810_s24, %s811_s27, %s812_s28  }
 0x175 PF: > { %p647_p2 = scmp.ge.s32.totalorder %s807_s19, 2  ;;  %s484_s15 = sand.u32 1, %s779_s12  }
 0x176   : > { %s485_s4 = scalar_lea.sflag [#allocation3], %s484_s15 }
 0x177   : > { %p644_p4 = pnand %p647_p2, %p893_p8 }
 0x179   : > { %p645_p5 = pneg %p644_p4 }
 0x17b   : > { %774 = dma.done.wait (%p645_p5), %s485_s4, 256  }
 0x17c   : > { %776 = vsyncadd (%p645_p5), %s485_s4, 4294967040  ;;  %s16_s19 = sadd.s32 1, %s807_s19   ;;  %s1026_s12 = smov %s783_s13 }
 0x17d   : > { %p13_p6 = scmp.ge.s32.totalorder %s16_s19, 6   ;;  %s1027_s13 = smov %s787_s14 }
 0x17e   : > { %s1028_s14 = smov %s902_s30  ;;  %s1029_s15 = smov %s799_s17 }
 0x17f   : > { %s1030_s16 = smov %s803_s18  ;;  %s1031_s17 = smov %s1034_s22 }
 0x180   : > { %s1032_s18 = smov %s1038_s23  ;;  %15 = sbr.rel (!%p13_p6) target bundleno = 5 (0x5), region = 67 }
 0x185   :  { %490 = vsyncpa [#allocation3], 1 }
 0x186   :  { %492 = vsyncpa [#allocation3 + $0x1], 1 }

</bundles_post_ra>
